<compile_context>
chip_gen: v7x
topology: tpu7x:2x2x1
jax: 0.10.0
libtpu: 0.0.40
codegen_flags: <defaults>
</compile_context>

<pallas_src>
import functools
import math

import jax
import jax.numpy as jnp
from jax.experimental import pallas as pl
from jax.experimental.pallas import tpu as pltpu


# ------------------------------ helpers -------------------------------------

def _round_up(x, m):
    return (x + m - 1) // m * m


def _tile(dim, target, align):
    """Tile size for a padded dim: full dim if small, else an aligned target tile."""
    if dim <= target:
        return dim
    return max(align, (target // align) * align)


def _divisor_tile(dim, target, align):
    """Largest aligned tile <= target that divides dim exactly (falls back to dim)."""
    if dim <= target:
        return dim
    t = (min(target, dim) // align) * align
    while t >= align:
        if dim % t == 0:
            return t
        t -= align
    return dim


# ----------------------------- linear kernel --------------------------------

def _linear_kernel(x_ref, w_ref, b_ref, o_ref, acc_ref):
    # x_ref: (tm, tk), w_ref: (tk, tn), b_ref: (1, tn), o_ref: (tm, tn)
    k = pl.program_id(2)

    @pl.when(k == 0)
    def _():
        acc_ref[...] = jnp.zeros(acc_ref.shape, acc_ref.dtype)

    acc_ref[...] += jnp.dot(x_ref[...], w_ref[...],
                            preferred_element_type=jnp.float32)

    @pl.when(k == pl.num_programs(2) - 1)
    def _():
        o_ref[...] = (acc_ref[...] + b_ref[...].astype(jnp.float32)).astype(o_ref.dtype)


def pallas_linear(x2d, w, b, *, tm_t=256, tn_t=256, tk_t=512):
    """x2d: (M, Din), w: (Dout, Din) torch-style, b: (Dout,) -> (M, Dout)."""
    M, Din = x2d.shape
    Dout = w.shape[0]

    tm = _tile(M, tm_t, 8)
    tn = _tile(Dout, tn_t, 128)
    tk = _tile(Din, tk_t, 128)
    Mp, Kp, Np = _round_up(M, tm), _round_up(Din, tk), _round_up(Dout, tn)

    wt = w.T                                              # (Din, Dout)
    xp = x2d if (Mp, Kp) == (M, Din) else jnp.pad(x2d, ((0, Mp - M), (0, Kp - Din)))
    wp = wt if (Kp, Np) == (Din, Dout) else jnp.pad(wt, ((0, Kp - Din), (0, Np - Dout)))
    bp = (b if Np == Dout else jnp.pad(b, (0, Np - Dout))).reshape(1, Np)

    grid = (Mp // tm, Np // tn, Kp // tk)
    out = pl.pallas_call(
        _linear_kernel,
        out_shape=jax.ShapeDtypeStruct((Mp, Np), x2d.dtype),
        grid_spec=pltpu.PrefetchScalarGridSpec(
            num_scalar_prefetch=0,
            grid=grid,
            in_specs=[
                pl.BlockSpec((tm, tk), lambda i, j, k: (i, k)),
                pl.BlockSpec((tk, tn), lambda i, j, k: (k, j)),
                pl.BlockSpec((1, tn), lambda i, j, k: (0, j)),
            ],
            out_specs=pl.BlockSpec((tm, tn), lambda i, j, k: (i, j)),
            scratch_shapes=[pltpu.VMEM((tm, tn), jnp.float32)],
        ),
        compiler_params=pltpu.CompilerParams(
            dimension_semantics=("parallel", "parallel", "arbitrary"),
            vmem_limit_bytes=64 * 1024 * 1024,
        ),
    )(xp, wp, bp)

    if (Mp, Np) != (M, Dout):
        out = out[:M, :Dout]
    return out


# --------------------------- flash attention kernel -------------------------

def _flash_attn_kernel(q_ref, k_ref, v_ref, o_ref, m_scr, l_scr, acc_scr, *, scale):
    # q_ref: (Hblk, tq, hd), k_ref/v_ref: (Hblk, tk, hd), o_ref: (Hblk, tq, hd)
    ki = pl.program_id(3)

    @pl.when(ki == 0)
    def _():
        m_scr[...] = jnp.full(m_scr.shape, -jnp.inf, dtype=m_scr.dtype)
        l_scr[...] = jnp.zeros(l_scr.shape, l_scr.dtype)
        acc_scr[...] = jnp.zeros(acc_scr.shape, acc_scr.dtype)

    q = q_ref[...] * scale                 # scale fused in-kernel
    k = k_ref[...]
    v = v_ref[...]

    # (Hblk, tq, tk) scores for this kv tile only -- never the full (S, S) matrix.
    s = jnp.einsum("hqd,hkd->hqk", q, k, preferred_element_type=jnp.float32)

    m_prev = m_scr[...]
    m_new = jnp.maximum(m_prev, jnp.max(s, axis=-1, keepdims=True))
    alpha = jnp.exp(m_prev - m_new)
    p = jnp.exp(s - m_new)

    l_scr[...] = alpha * l_scr[...] + jnp.sum(p, axis=-1, keepdims=True)
    acc_scr[...] = alpha * acc_scr[...] + jnp.einsum(
        "hqk,hkd->hqd", p.astype(v.dtype), v, preferred_element_type=jnp.float32)
    m_scr[...] = m_new

    @pl.when(ki == pl.num_programs(3) - 1)
    def _():
        # Deferred normalization: one reciprocal on (tq, 1), applied to the (tq, hd)
        # accumulator instead of dividing the (tq, tk) probabilities every step.
        # (approx=True would push it to the EUP; kept exact for the f32 check here.)
        out = acc_scr[...] * pl.reciprocal(l_scr[...], approx=False)
        o_ref[...] = out.astype(o_ref.dtype)


def pallas_flash_attention(qkvh, scale, *, tq_t=256, tk_t=256):
    """qkvh: (3, B, H, S, hd) packed q/k/v (head-major).  Returns (B, H, S, hd)."""
    _, B, H, S, hd = qkvh.shape
    tq = _divisor_tile(S, tq_t, 8)
    tk = _divisor_tile(S, tk_t, 8)
    # Batch several heads per grid step so the MXU sees larger batched matmuls
    # and the ~0.35us/step grid overhead is amortized.
    hblk = _divisor_tile(H, max(1, 1024 // max(hd, 1)), 1)

    grid = (B, H // hblk, S // tq, S // tk)

    q_spec = pl.BlockSpec((pl.Squeezed(), pl.Squeezed(), hblk, tq, hd),
                          lambda b, hb, qi, ki: (0, b, hb, qi, 0))
    k_spec = pl.BlockSpec((pl.Squeezed(), pl.Squeezed(), hblk, tk, hd),
                          lambda b, hb, qi, ki: (1, b, hb, ki, 0))
    v_spec = pl.BlockSpec((pl.Squeezed(), pl.Squeezed(), hblk, tk, hd),
                          lambda b, hb, qi, ki: (2, b, hb, ki, 0))
    o_spec = pl.BlockSpec((pl.Squeezed(), hblk, tq, hd),
                          lambda b, hb, qi, ki: (b, hb, qi, 0))

    kernel = functools.partial(_flash_attn_kernel, scale=scale)
    return pl.pallas_call(
        kernel,
        out_shape=jax.ShapeDtypeStruct((B, H, S, hd), qkvh.dtype),
        grid_spec=pltpu.PrefetchScalarGridSpec(
            num_scalar_prefetch=0,
            grid=grid,
            in_specs=[q_spec, k_spec, v_spec],
            out_specs=o_spec,
            scratch_shapes=[
                pltpu.VMEM((hblk, tq, 1), jnp.float32),    # running max
                pltpu.VMEM((hblk, tq, 1), jnp.float32),    # running denom
                pltpu.VMEM((hblk, tq, hd), jnp.float32),   # output accumulator
            ],
        ),
        compiler_params=pltpu.CompilerParams(
            dimension_semantics=("parallel", "parallel", "parallel", "arbitrary"),
            vmem_limit_bytes=64 * 1024 * 1024,
        ),
    )(qkvh, qkvh, qkvh)


# ------------------------------ full forward ---------------------------------

def flash_attention_forward(x, params, nhead):
    """x: (S, B, D) -> (S, B, D).  Mirrors nn.MultiheadAttention(x, x, x)[0]."""
    S, B, D = x.shape
    H = nhead
    hd = D // H
    scale = 1.0 / math.sqrt(hd)

    # 1) fused qkv projection (tiled)
    x2d = x.reshape(S * B, D)
    qkv = pallas_linear(x2d, params["in_proj_weight"], params["in_proj_bias"])  # (S*B, 3D)

    # 2) single relayout to head-major; the q/k/v split is handled by the
    #    attention index_maps over the leading axis of size 3.
    qkvh = qkv.reshape(S, B, 3, H, hd).transpose(2, 1, 3, 0, 4)   # (3, B, H, S, hd)

    # 3) flash attention (online softmax, heads blocked per step, scale fused in-kernel)
    attn = pallas_flash_attention(qkvh, scale)                    # (B, H, S, hd)

    # 4) merge heads (single transpose) + output projection (tiled)
    attn2d = attn.transpose(2, 0, 1, 3).reshape(S * B, D)         # rows = s*B + b, cols = h*hd + d
    out = pallas_linear(attn2d, params["out_proj_weight"], params["out_proj_bias"])
    return out.reshape(S, B, D)


# -------------------------- deterministic params -----------------------------

def init_params(d_model, key):
    k1, k2 = jax.random.split(key, 2)
    bound_in = math.sqrt(6.0 / (3 * d_model + d_model))
    in_proj_weight = jax.random.uniform(
        k1, (3 * d_model, d_model), jnp.float32, -bound_in, bound_in)
    in_proj_bias = jnp.zeros((3 * d_model,), jnp.float32)
    bound_out = math.sqrt(6.0 / (d_model + d_model))
    out_proj_weight = jax.random.uniform(
        k2, (d_model, d_model), jnp.float32, -bound_out, bound_out)
    out_proj_bias = jnp.zeros((d_model,), jnp.float32)
    return {
        "in_proj_weight": in_proj_weight,
        "in_proj_bias": in_proj_bias,
        "out_proj_weight": out_proj_weight,
        "out_proj_bias": out_proj_bias,
    }


# ------------------------------ reference -----------------------------------

def reference_forward(x, params, nhead):
    S, B, D = x.shape
    hd = D // nhead
    qkv = x.reshape(S * B, D) @ params["in_proj_weight"].T + params["in_proj_bias"]
    qkv = qkv.reshape(S, B, 3 * D)
    q, k, v = jnp.split(qkv, 3, axis=-1)
    to_heads = lambda t: t.reshape(S, B * nhead, hd).transpose(1, 0, 2)
    q = to_heads(q) / math.sqrt(hd)
    k = to_heads(k)
    v = to_heads(v)
    s = jnp.einsum("bqd,bkd->bqk", q, k)
    p = jax.nn.softmax(s, axis=-1)
    a = jnp.einsum("bqk,bkd->bqd", p, v)
    a = a.transpose(1, 0, 2).reshape(S * B, D)
    out = a @ params["out_proj_weight"].T + params["out_proj_bias"]
    return out.reshape(S, B, D)


# --------------------------------- main --------------------------------------

if __name__ == "__main__":
    d_model, nhead = 32, 4
    seq, batch = 8, 2

    key = jax.random.PRNGKey(0)
    kx, kp = jax.random.split(key)
    x = jax.random.normal(kx, (seq, batch, d_model), jnp.float32)
    params = init_params(d_model, kp)

    out = flash_attention_forward(x, params, nhead)
    out = jax.block_until_ready(out)

    ref = reference_forward(x, params, nhead)
    assert out.shape == (seq, batch, d_model)
    assert jnp.allclose(out, ref, atol=2e-4, rtol=2e-4), "mismatch vs reference"

    print("KERNEL_OK")
</pallas_src>

<mosaic_0001>
module attributes {stable_mosaic.version = 11 : i64} {
  func.func @_linear_kernel(%arg0: i32, %arg1: i32, %arg2: i32, %arg3: memref<16x32xf32, #tpu.memory_space<vmem>>, %arg4: memref<32x96xf32, #tpu.memory_space<vmem>>, %arg5: memref<1x96xf32, #tpu.memory_space<vmem>>, %arg6: memref<16x96xf32, #tpu.memory_space<vmem>>, %arg7: memref<16x96xf32, #tpu.memory_space<vmem>>) attributes {dimension_semantics = [#tpu.dimension_semantics<parallel>, #tpu.dimension_semantics<parallel>, #tpu.dimension_semantics<arbitrary>], iteration_bounds = array<i64: 1, 1, 1>, scalar_prefetch = 0 : i64, scratch_operands = 1 : i64, tpu.core_type = #tpu.core_type<tc>, window_params = [{transform_indices = @transform_0, window_bounds = array<i64: 16, 32>}, {transform_indices = @transform_1, window_bounds = array<i64: 32, 96>}, {transform_indices = @transform_2, window_bounds = array<i64: 1, 96>}, {transform_indices = @transform_3, window_bounds = array<i64: 16, 96>}]} {
    %c0_i32 = arith.constant 0 : i32
    %0 = arith.cmpi eq, %arg2, %c0_i32 : i32
    %1 = arith.extui %0 : i1 to i32
    %c0_i32_0 = arith.constant 0 : i32
    %2 = arith.cmpi ne, %1, %c0_i32_0 : i32
    scf.if %2 {
      %cst_10 = arith.constant 0.000000e+00 : f32
      %12 = vector.broadcast %cst_10 : f32 to vector<16x96xf32>
      %c0_11 = arith.constant 0 : index
      %c0_12 = arith.constant 0 : index
      %13 = vector.load %arg7[%c0_11, %c0_12] : memref<16x96xf32, #tpu.memory_space<vmem>>, vector<16x96xf32>
      tpu.vector_store %arg7[%c0_11, %c0_12], %12 {strides = array<i32>} : memref<16x96xf32, #tpu.memory_space<vmem>>, vector<16x96xf32>,
    } else {
    }
    %c0 = arith.constant 0 : index
    %c0_1 = arith.constant 0 : index
    %3 = vector.load %arg7[%c0, %c0_1] : memref<16x96xf32, #tpu.memory_space<vmem>>, vector<16x96xf32>
    %c0_2 = arith.constant 0 : index
    %c0_3 = arith.constant 0 : index
    %4 = vector.load %arg3[%c0_2, %c0_3] : memref<16x32xf32, #tpu.memory_space<vmem>>, vector<16x32xf32>
    %c0_4 = arith.constant 0 : index
    %c0_5 = arith.constant 0 : index
    %5 = vector.load %arg4[%c0_4, %c0_5] : memref<32x96xf32, #tpu.memory_space<vmem>>, vector<32x96xf32>
    %cst = arith.constant dense<0.000000e+00> : vector<16x96xf32>
    %6 = tpu.matmul %4, %5, %cst {dimension_numbers = #tpu.dot_dimension_numbers<[1], [0], [0], [1], [0, 0, 1, 1], [], []>} : vector<16x32xf32>, vector<32x96xf32>, vector<16x96xf32> -> vector<16x96xf32>
    %7 = arith.addf %3, %6 : vector<16x96xf32>
    %c0_6 = arith.constant 0 : index
    %c0_7 = arith.constant 0 : index
    %8 = vector.load %arg7[%c0_6, %c0_7] : memref<16x96xf32, #tpu.memory_space<vmem>>, vector<16x96xf32>
    tpu.vector_store %arg7[%c0_6, %c0_7], %7 {strides = array<i32>} : memref<16x96xf32, #tpu.memory_space<vmem>>, vector<16x96xf32>,
    %c0_i32_8 = arith.constant 0 : i32
    %9 = arith.cmpi eq, %arg2, %c0_i32_8 : i32
    %10 = arith.extui %9 : i1 to i32
    %c0_i32_9 = arith.constant 0 : i32
    %11 = arith.cmpi ne, %10, %c0_i32_9 : i32
    scf.if %11 {
      %c0_10 = arith.constant 0 : index
      %c0_11 = arith.constant 0 : index
      %12 = vector.load %arg7[%c0_10, %c0_11] : memref<16x96xf32, #tpu.memory_space<vmem>>, vector<16x96xf32>
      %c0_12 = arith.constant 0 : index
      %c0_13 = arith.constant 0 : index
      %13 = vector.load %arg5[%c0_12, %c0_13] : memref<1x96xf32, #tpu.memory_space<vmem>>, vector<1x96xf32>
      %14 = vector.broadcast %13 : vector<1x96xf32> to vector<16x96xf32>
      %15 = arith.addf %12, %14 : vector<16x96xf32>
      %c0_14 = arith.constant 0 : index
      %c0_15 = arith.constant 0 : index
      %16 = vector.load %arg6[%c0_14, %c0_15] : memref<16x96xf32, #tpu.memory_space<vmem>>, vector<16x96xf32>
      tpu.vector_store %arg6[%c0_14, %c0_15], %15 {strides = array<i32>} : memref<16x96xf32, #tpu.memory_space<vmem>>, vector<16x96xf32>,
    } else {
    }
    return
  }
  func.func @transform_0(%arg0: i32, %arg1: i32, %arg2: i32) -> (i32, i32) {
    %c0_i32 = arith.constant 0 : i32
    return %arg0, %arg2 : i32, i32
  }
  func.func @transform_1(%arg0: i32, %arg1: i32, %arg2: i32) -> (i32, i32) {
    %c0_i32 = arith.constant 0 : i32
    return %arg2, %arg1 : i32, i32
  }
  func.func @transform_2(%arg0: i32, %arg1: i32, %arg2: i32) -> (i32, i32) {
    %c0_i32 = arith.constant 0 : i32
    %c0_i32_0 = arith.constant 0 : i32
    return %c0_i32, %arg1 : i32, i32
  }
  func.func @transform_3(%arg0: i32, %arg1: i32, %arg2: i32) -> (i32, i32) {
    %c0_i32 = arith.constant 0 : i32
    return %arg0, %arg1 : i32, i32
  }
}

</mosaic_0001>

<bundles_post_ra>
// kernel: tpu_custom_call.1
= control target key start
LH: loop header
LB: loop body
LE: loop exit
PB: predicated region body
PF: predicated region fallthrough
CT: control target
= control target key end

     0   :  { %8 = vsyncpa [#allocation4], 0  ;;  %s416_s0 = inlined_call_operand.hbm [shape: f32[16,32], index: 0, kind: input, shape index: {}]   ;;  %s417_s1 = inlined_call_operand.hbm [shape: f32[32,96], index: 1, kind: input, shape index: {}]   ;;  %s418_s2 = inlined_call_operand.hbm [shape: f32[1,96], index: 2, kind: input, shape index: {}]   ;;  %s419_s3 = inlined_call_operand.hbm [shape: f32[16,96], index: 3, kind: output, shape index: {}]  }
   0x1   :  { %9 = vsyncpa [#allocation7], 0 }
   0x2   :  { %10 = vsyncpa [#allocation5], 0  ;;  %s319_s12 = smov [#allocation6]   ;;  %s320_s14 = smov [#allocation3]  }
   0x3   :  { %s28_s13 = sshll.u32 %s319_s12, 4  ;;  %s16_s15 = sshll.u32 %s320_s14, 4  ;;  %s29_s13 = int_to_ptr.vmem [resolvable:$true] %s28_s13  ;;  %s346_s15 = int_to_ptr.vmem [resolvable:$true] %s16_s15 }
   0x4   :  { %s225_s18 = scalar_lea.hbm %s417_s1, 512 }
   0x5   :  { %p226_p0 = scmp.ne.s32.totalorder %s417_s1, %s225_s18  ;;  %p229_p1 = scmp.lt.u32.totalorder %s225_s18, %s417_s1 }
   0x7   :  { %p231_p2 = pnand %p229_p1, %p226_p0 }
   0x9   :  { %234 = shalt.err (!%p231_p2)
}
   0xa   :  { %s235_s23 = scalar_lea.vmem %s29_s13, 512  ;;  %p240_p4 = scmp.lt.s32.totalorder %s29_s13, %s29_s13 }
   0xb   :  { %p236_p3 = scmp.ne.s32.totalorder %s29_s13, %s235_s23  ;;  %p241_p5 = scmp.lt.s32.totalorder %s235_s23, %s235_s23 }
   0xd   :  { %p242_p6 = por %p241_p5, %p240_p4 }
   0xf   :  { %p243_p7 = pnand %p242_p6, %p236_p3 }
  0x11   :  { %246 = shalt.err (!%p243_p7)
}
  0x12   :  { %s321_s24 = smov 128   ;;  %s322_s25 = smov 8  }
  0x13   :  { %34 = dma.hbm_to_vmem [thread:$0]  %s417_s1, 512, %s29_s13, [#allocation7], %s321_s24, %s321_s24, %s322_s25  }
  0x14   :  { %s247_s30 = scalar_lea.hbm %s416_s0, 256 }
  0x15   :  { %p248_p8 = scmp.ne.s32.totalorder %s416_s0, %s247_s30  ;;  %p251_p9 = scmp.lt.u32.totalorder %s247_s30, %s416_s0 }
  0x17   :  { %p253_p10 = pnand %p251_p9, %p248_p8 }
  0x19   :  { %256 = shalt.err (!%p253_p10)
}
  0x1a   :  { %s257_s8 = scalar_lea.vmem %s346_s15, 256  ;;  %p262_p12 = scmp.lt.s32.totalorder %s346_s15, %s346_s15 }
  0x1b   :  { %p258_p11 = scmp.ne.s32.totalorder %s346_s15, %s257_s8  ;;  %p263_p13 = scmp.lt.s32.totalorder %s257_s8, %s257_s8 }
  0x1d   :  { %p264_p0 = por %p263_p13, %p262_p12 }
  0x1f   :  { %p265_p1 = pnand %p264_p0, %p258_p11 }
  0x21   :  { %268 = shalt.err (!%p265_p1)
}
  0x22   :  { %22 = dma.hbm_to_vmem [thread:$0]  %s416_s0, 256, %s346_s15, [#allocation4], %s321_s24, %s321_s24, %s322_s25  }
  0x23   :  { %s323_s10 = smov [#allocation8]   ;;  %s269_s14 = scalar_lea.hbm %s418_s2, 16 }
  0x24   :  { %s41_s11 = sshll.u32 %s323_s10, 4  ;;  %p270_p2 = scmp.ne.s32.totalorder %s418_s2, %s269_s14  ;;  %s42_s11 = int_to_ptr.vmem [resolvable:$true] %s41_s11 }
  0x25   :  { %p273_p3 = scmp.lt.u32.totalorder %s269_s14, %s418_s2 }
  0x27   :  { %p275_p4 = pnand %p273_p3, %p270_p2 }
  0x29   :  { %278 = shalt.err (!%p275_p4)
}
  0x2a   :  { %s279_s20 = scalar_lea.vmem %s42_s11, 16  ;;  %s283_s0 = scalar_lea.vmem %s42_s11, 32 }
  0x2b   :  { %p280_p5 = scmp.ne.s32.totalorder %s42_s11, %s279_s20  ;;  %p284_p6 = scmp.lt.s32.totalorder %s42_s11, %s42_s11 }
  0x2c   :  { %p285_p7 = scmp.lt.s32.totalorder %s283_s0, %s279_s20 }
  0x2e   :  { %p286_p8 = por %p285_p7, %p284_p6 }
  0x30   :  { %p287_p9 = pnand %p286_p8, %p280_p5 }
  0x32   :  { %290 = shalt.err (!%p287_p9)
}
  0x33   :  { %44 = dma.hbm_to_vmem [thread:$0]  %s418_s2, 16, %s42_s11, [#allocation7]  }
  0x34   :  { %313 = dma.done.wait [#allocation4], 256  }
  0x35   :  { %314 = vsyncadd [#allocation4], 4294967040 }
  0x36   :  { %315 = dma.done.wait [#allocation7], 528  }
  0x37   :  { %316 = vsyncadd [#allocation7], 4294966768  ;;  %vm58_vm0 = vcmask 785408   ;;  %v324_v0 = vmov 0.0   ;;  %vm69_vm1 = vcmask 261120   ;;  %v65_v1 = vld [vmem:[#allocation6] sm:$0xff] }
  0x38   :  { %60 = vst.msk [vmem:[#allocation2 + $0x8] sm:$0xff] %vm58_vm0, %v324_v0  ;;  %59 = vst.msk [vmem:[#allocation2] sm:$0xff] %vm58_vm0, %v324_v0  ;;  %v66_v2 = vld [vmem:[#allocation6 + $0x8] sm:$0xff]  ;;  %v67_v3 = vld [vmem:[#allocation6 + $0x10] sm:$0xff]  ;;  %s325_s2 = smov [#allocation9]  }
  0x39   :  { %v210_v4 = vpack.c.bf16 %v66_v2, %v65_v1  ;;  %v68_v5 = vld [vmem:[#allocation6 + $0x18] sm:$0xff]  ;;  %v63_v6 = vld [vmem:[#allocation3] sm:$0xff]  ;;  %v192_v15 = vld [vmem:[#allocation8] ss:$0 sm:$0xff]  ;;  %s177_s22 = sshll.u32 %s325_s2, 4  ;;  %s178_s22 = int_to_ptr.vmem [resolvable:$true] %s177_s22 }
  0x3a   :  { %v214_v7 = vpack.c.bf16 %v68_v5, %v67_v3  ;;  %207 = vmatprep.mubr.msk.f32.mxu0 %vm69_vm1, %v63_v6  ;;  %v64_v8 = vld [vmem:[#allocation3 + $0x8] sm:$0xff]  ;;  %s291_s23 = scalar_lea.vmem %s178_s22, 256  ;;  %p296_p11 = scmp.lt.s32.totalorder %s178_s22, %s178_s22 }
  0x3b   :  { %211 = vmatprep.subr.bf16.mxu0 %v210_v4  ;;  %p292_p10 = scmp.ne.s32.totalorder %s178_s22, %s291_s23  ;;  %p297_p12 = scmp.lt.s32.totalorder %s291_s23, %s291_s23 }
  0x3c   :  { %213 = vmatpush3.bf16.msra.mxu0 %v210_v4 }
  0x3d   :  { %215 = vmatprep.subr.bf16.mxu0 %v214_v7  ;;  %p298_p13 = por %p297_p12, %p296_p11 }
  0x3f   :  { %v62_v9 = vld [vmem:[#allocation2 + $0x8] sm:$0xff]  ;;  %v61_v10 = vld [vmem:[#allocation2] sm:$0xff]  ;;  %p299_p0 = pnand %p298_p13, %p292_p10 }
  0x40   :  { %217 = vmatpush3.bf16.msra.mxu0 %v214_v7 }
  0x43   :  { %208 = vmatmul.mubr.msk.f32.vlgmr.msra.gmra.mrb[0].mxu0 %vm69_vm1, %v64_v8 }
 0x116   :  { %v209_v11 = vpop.f32.mrb[0].mxu0 }
 0x117   :  { %v152_v12 = vadd.f32 %v209_v11, %v62_v9  ;;  %v142_v13 = vpop.f32.mrb[1].mxu0 }
 0x118   :  { %v151_v14 = vadd.f32 %v142_v13, %v61_v10 }
 0x119   :  { %155 = vst.msk [vmem:[#allocation2 + $0x8] sm:$0xff] %vm58_vm0, %v152_v12 }
 0x11a   :  { %154 = vst.msk [vmem:[#allocation2] sm:$0xff] %vm58_vm0, %v151_v14 }
 0x120   :  { %v160_v16 = vld [vmem:[#allocation2 + $0x8] sm:$0xff] }
 0x121   :  { %v159_v17 = vld [vmem:[#allocation2] sm:$0xff]  ;;  %v169_v18 = vadd.f32 %v192_v15, %v160_v16 }
 0x122   :  { %v168_v19 = vadd.f32 %v192_v15, %v159_v17 }
 0x123   :  { %171 = vst.msk [vmem:[#allocation9 + $0x8] sm:$0xff] %vm58_vm0, %v169_v18 }
 0x124   :  { %170 = vst.msk [vmem:[#allocation9] sm:$0xff] %vm58_vm0, %v168_v19 }
 0x125   :  { %302 = shalt.err (!%p299_p0)
}
 0x126   :  { %s303_s28 = scalar_lea.hbm %s419_s3, 256 }
 0x127   :  { %p304_p1 = scmp.ne.s32.totalorder %s419_s3, %s303_s28  ;;  %p307_p2 = scmp.lt.u32.totalorder %s303_s28, %s419_s3 }
 0x129   :  { %p309_p3 = pnand %p307_p2, %p304_p1 }
 0x12b   :  { %312 = shalt.err (!%p309_p3)
}
 0x12c   :  { %183 = dma.vmem_to_hbm [thread:$0]  %s178_s22, 256, %s419_s3, [#allocation5], %s321_s24, %s321_s24, %s322_s25  }
 0x12d   :  { %317 = dma.done.wait [#allocation5], 256  }
 0x12e   :  { %318 = vsyncadd [#allocation5], 4294967040 }
 0x12f   :  { %187 = vsyncpa [#allocation4], 1 }
 0x130   :  { %188 = vsyncpa [#allocation7], 1 }
 0x131   :  { %189 = vsyncpa [#allocation5], 1 }

</bundles_post_ra>
